<compile_context>
chip_gen: v7x
topology: tpu7x:2x2x1
jax: 0.10.0
libtpu: 0.0.40
codegen_flags: <defaults>
</compile_context>

<pallas_src>
import functools

import jax
import jax.numpy as jnp
from jax.experimental import pallas as pl
from jax.experimental.pallas import tpu as pltpu


# ------------------------------- Pallas kernel ------------------------------ #

def _mlp_kernel(x_ref, w1_ref, b1_ref, w2_ref, b2_ref, y_ref, *, h_chunk):
    """One N-tile of  y = relu(x @ W1 + b1) @ W2 + b2.

    x/W1/W2 are bf16 (MXU-native operands), accumulation and the bias/ReLU
    epilogue are f32, output is f32.  The hidden dim is walked in statically
    unrolled `h_chunk`-wide pieces so the fc1 of chunk c+1 overlaps the fc2
    drain of chunk c.
    """
    x = x_ref[...]                                   # (tile_n, Din) bf16
    hidden = w1_ref.shape[1]
    y = jnp.zeros(y_ref.shape, jnp.float32)         # (tile_n, Dout) f32
    for c in range(hidden // h_chunk):               # static unroll (2 for H=512)
        lo = c * h_chunk
        h = jnp.dot(x, w1_ref[:, lo:lo + h_chunk],
                    preferred_element_type=jnp.float32)       # f32 accum on MXU
        h = jnp.maximum(h + b1_ref[:, lo:lo + h_chunk], 0.0)  # bias + ReLU in f32
        y = y + jnp.dot(h.astype(w2_ref.dtype),                # bf16 operand
                        w2_ref[lo:lo + h_chunk, :],
                        preferred_element_type=jnp.float32)
    y_ref[...] = (y + b2_ref[...]).astype(y_ref.dtype)


# ------------------------------- host wrapper ------------------------------- #

def _round_up(n, m):
    return ((n + m - 1) // m) * m


def _cdiv(a, b):
    return (a + b - 1) // b


def mlp_forward(x, params, *, tile_n=512):
    """x: [..., Din] -> [..., Dout] computed as fc2(relu(fc1(x)))."""
    w1, b1, w2, b2 = params["w1"], params["b1"], params["w2"], params["b2"]
    din, hidden = w1.shape
    dout = w2.shape[1]
    out_shape = x.shape[:-1] + (dout,)

    # bf16 operands for the MXU; biases stay f32 for the elementwise epilogue.
    x2d = x.reshape(-1, din).astype(jnp.bfloat16)
    w1b = w1.astype(jnp.bfloat16)
    w2b = w2.astype(jnp.bfloat16)
    b1f = b1.astype(jnp.float32)
    b2f = b2.astype(jnp.float32)
    n = x2d.shape[0]

    # Token-dim tile: large (amortize ~0.35us/step), multiple of 16 (bf16
    # sublane packing).  Small n collapses to a single full-extent tile.
    tile = min(tile_n, _round_up(n, 16))
    # Give v7x's two TensorCores separate tiles when there is enough work.
    if n >= 512 and _cdiv(n, tile) < 2:
        tile = _round_up(_cdiv(n, 2), 16)
    grid_n = _cdiv(n, tile)

    # Hidden-dim chunking (statically unrolled inside the kernel).
    h_chunk = 256 if (hidden % 256 == 0 and hidden > 256) else hidden

    # No whole-array pad: Pallas masks the partial last block's stores, and the
    # garbage rows read for that block only ever influence garbage (masked) rows.
    y2d = pl.pallas_call(
        functools.partial(_mlp_kernel, h_chunk=h_chunk),
        out_shape=jax.ShapeDtypeStruct((n, dout), jnp.float32),
        grid=(grid_n,),
        in_specs=[
            pl.BlockSpec((tile, din), lambda i: (i, 0)),     # x tile (pipelined)
            pl.BlockSpec((din, hidden), lambda i: (0, 0)),   # W1 (VMEM-resident)
            pl.BlockSpec((1, hidden), lambda i: (0, 0)),     # b1
            pl.BlockSpec((hidden, dout), lambda i: (0, 0)),  # W2 (VMEM-resident)
            pl.BlockSpec((1, dout), lambda i: (0, 0)),       # b2
        ],
        out_specs=pl.BlockSpec((tile, dout), lambda i: (i, 0)),
        compiler_params=pltpu.CompilerParams(
            # Independent N-tiles: shard across TensorCores on v7x megacore.
            dimension_semantics=("parallel",),
        ),
    )(x2d, w1b, b1f, w2b, b2f)

    return y2d.reshape(out_shape)


# --------------------------------- params ----------------------------------- #

def init_params(key, input_size=128, output_size=128, hidden_size=512):
    # Matches torch.nn.Linear default init scale (U(-1/sqrt(fan_in), 1/sqrt(fan_in))),
    # with weights stored pre-transposed ([in, out]) so the kernel computes x @ W.
    k1, k2, k3, k4 = jax.random.split(key, 4)
    s1 = 1.0 / (input_size ** 0.5)
    s2 = 1.0 / (hidden_size ** 0.5)
    return {
        "w1": jax.random.uniform(k1, (input_size, hidden_size), jnp.float32, -s1, s1),
        "b1": jax.random.uniform(k2, (1, hidden_size), jnp.float32, -s1, s1),
        "w2": jax.random.uniform(k3, (hidden_size, output_size), jnp.float32, -s2, s2),
        "b2": jax.random.uniform(k4, (1, output_size), jnp.float32, -s2, s2),
    }


# ----------------------------------- main ------------------------------------ #

if __name__ == "__main__":
    B, S = 2, 8                      # small token batch
    Din, H, Dout = 128, 512, 128     # module defaults

    key = jax.random.PRNGKey(0)
    kx, kp = jax.random.split(key)
    x = jax.random.normal(kx, (B, S, Din), jnp.float32)
    params = init_params(kp, input_size=Din, output_size=Dout, hidden_size=H)

    y = jax.jit(lambda x: mlp_forward(x, params))(x)
    jax.block_until_ready(y)

    # Reference check against plain f32 XLA (kernel uses bf16 MXU operands with
    # f32 accumulation, so tolerance is relaxed accordingly).
    y_ref = jnp.maximum(x.reshape(-1, Din) @ params["w1"] + params["b1"], 0.0)
    y_ref = (y_ref @ params["w2"] + params["b2"]).reshape(B, S, Dout)

    assert y.shape == (B, S, Dout) and y.dtype == jnp.float32
    assert jnp.allclose(y, y_ref, atol=5e-2, rtol=5e-2)
    print("KERNEL_OK")
</pallas_src>

<mosaic_0001>
module attributes {stable_mosaic.version = 11 : i64} {
  func.func @_mlp_kernel(%arg0: i32, %arg1: memref<16x128xbf16, #tpu.memory_space<vmem>>, %arg2: memref<128x512xbf16, #tpu.memory_space<vmem>>, %arg3: memref<1x512xf32, #tpu.memory_space<vmem>>, %arg4: memref<512x128xbf16, #tpu.memory_space<vmem>>, %arg5: memref<1x128xf32, #tpu.memory_space<vmem>>, %arg6: memref<16x128xf32, #tpu.memory_space<vmem>>) attributes {dimension_semantics = [#tpu.dimension_semantics<parallel>], iteration_bounds = array<i64: 1>, scalar_prefetch = 0 : i64, scratch_operands = 0 : i64, tpu.core_type = #tpu.core_type<tc>, window_params = [{transform_indices = @transform_0, window_bounds = array<i64: 16, 128>}, {pipeline_mode = #tpu.pipeline_mode<synchronous>, transform_indices = @transform_1, window_bounds = array<i64: 128, 512>}, {pipeline_mode = #tpu.pipeline_mode<synchronous>, transform_indices = @transform_2, window_bounds = array<i64: 1, 512>}, {pipeline_mode = #tpu.pipeline_mode<synchronous>, transform_indices = @transform_3, window_bounds = array<i64: 512, 128>}, {pipeline_mode = #tpu.pipeline_mode<synchronous>, transform_indices = @transform_4, window_bounds = array<i64: 1, 128>}, {transform_indices = @transform_5, window_bounds = array<i64: 16, 128>}]} {
    %c0 = arith.constant 0 : index
    %c0_0 = arith.constant 0 : index
    %0 = vector.load %arg1[%c0, %c0_0] : memref<16x128xbf16, #tpu.memory_space<vmem>>, vector<16x128xbf16>
    %cst = arith.constant 0.000000e+00 : f32
    %1 = vector.broadcast %cst : f32 to vector<16x128xf32>
    %c0_1 = arith.constant 0 : index
    %c0_2 = arith.constant 0 : index
    %2 = vector.load %arg2[%c0_1, %c0_2] : memref<128x512xbf16, #tpu.memory_space<vmem>>, vector<128x256xbf16>
    %cst_3 = arith.constant dense<0.000000e+00> : vector<16x256xf32>
    %3 = tpu.matmul %0, %2, %cst_3 {dimension_numbers = #tpu.dot_dimension_numbers<[1], [0], [0], [1], [0, 0, 1, 1], [], []>} : vector<16x128xbf16>, vector<128x256xbf16>, vector<16x256xf32> -> vector<16x256xf32>
    %c0_4 = arith.constant 0 : index
    %c0_5 = arith.constant 0 : index
    %4 = vector.load %arg3[%c0_4, %c0_5] : memref<1x512xf32, #tpu.memory_space<vmem>>, vector<1x256xf32>
    %5 = vector.broadcast %4 : vector<1x256xf32> to vector<16x256xf32>
    %6 = arith.addf %3, %5 : vector<16x256xf32>
    %cst_6 = arith.constant 0.000000e+00 : f32
    %7 = vector.broadcast %cst_6 : f32 to vector<16x256xf32>
    %8 = arith.maximumf %6, %7 : vector<16x256xf32>
    %9 = arith.truncf %8 : vector<16x256xf32> to vector<16x256xbf16>
    %c0_7 = arith.constant 0 : index
    %c0_8 = arith.constant 0 : index
    %10 = vector.load %arg4[%c0_7, %c0_8] : memref<512x128xbf16, #tpu.memory_space<vmem>>, vector<256x128xbf16>
    %cst_9 = arith.constant dense<0.000000e+00> : vector<16x128xf32>
    %11 = tpu.matmul %9, %10, %cst_9 {dimension_numbers = #tpu.dot_dimension_numbers<[1], [0], [0], [1], [0, 0, 1, 1], [], []>} : vector<16x256xbf16>, vector<256x128xbf16>, vector<16x128xf32> -> vector<16x128xf32>
    %12 = arith.addf %1, %11 : vector<16x128xf32>
    %c0_10 = arith.constant 0 : index
    %c256 = arith.constant 256 : index
    %13 = vector.load %arg2[%c0_10, %c256] : memref<128x512xbf16, #tpu.memory_space<vmem>>, vector<128x256xbf16>
    %cst_11 = arith.constant dense<0.000000e+00> : vector<16x256xf32>
    %14 = tpu.matmul %0, %13, %cst_11 {dimension_numbers = #tpu.dot_dimension_numbers<[1], [0], [0], [1], [0, 0, 1, 1], [], []>} : vector<16x128xbf16>, vector<128x256xbf16>, vector<16x256xf32> -> vector<16x256xf32>
    %c0_12 = arith.constant 0 : index
    %c256_13 = arith.constant 256 : index
    %15 = vector.load %arg3[%c0_12, %c256_13] : memref<1x512xf32, #tpu.memory_space<vmem>>, vector<1x256xf32>
    %16 = vector.broadcast %15 : vector<1x256xf32> to vector<16x256xf32>
    %17 = arith.addf %14, %16 : vector<16x256xf32>
    %cst_14 = arith.constant 0.000000e+00 : f32
    %18 = vector.broadcast %cst_14 : f32 to vector<16x256xf32>
    %19 = arith.maximumf %17, %18 : vector<16x256xf32>
    %20 = arith.truncf %19 : vector<16x256xf32> to vector<16x256xbf16>
    %c256_15 = arith.constant 256 : index
    %c0_16 = arith.constant 0 : index
    %21 = vector.load %arg4[%c256_15, %c0_16] : memref<512x128xbf16, #tpu.memory_space<vmem>>, vector<256x128xbf16>
    %cst_17 = arith.constant dense<0.000000e+00> : vector<16x128xf32>
    %22 = tpu.matmul %20, %21, %cst_17 {dimension_numbers = #tpu.dot_dimension_numbers<[1], [0], [0], [1], [0, 0, 1, 1], [], []>} : vector<16x256xbf16>, vector<256x128xbf16>, vector<16x128xf32> -> vector<16x128xf32>
    %23 = arith.addf %12, %22 : vector<16x128xf32>
    %c0_18 = arith.constant 0 : index
    %c0_19 = arith.constant 0 : index
    %24 = vector.load %arg5[%c0_18, %c0_19] : memref<1x128xf32, #tpu.memory_space<vmem>>, vector<1x128xf32>
    %25 = vector.broadcast %24 : vector<1x128xf32> to vector<16x128xf32>
    %26 = arith.addf %23, %25 : vector<16x128xf32>
    %c0_20 = arith.constant 0 : index
    %c0_21 = arith.constant 0 : index
    %27 = vector.load %arg6[%c0_20, %c0_21] : memref<16x128xf32, #tpu.memory_space<vmem>>, vector<16x128xf32>
    tpu.vector_store %arg6[%c0_20, %c0_21], %26 {strides = array<i32>} : memref<16x128xf32, #tpu.memory_space<vmem>>, vector<16x128xf32>,
    return
  }
  func.func @transform_0(%arg0: i32) -> (i32, i32) {
    %c0_i32 = arith.constant 0 : i32
    %c0_i32_0 = arith.constant 0 : i32
    return %arg0, %c0_i32 : i32, i32
  }
  func.func @transform_1(%arg0: i32) -> (i32, i32) {
    %c0_i32 = arith.constant 0 : i32
    %c0_i32_0 = arith.constant 0 : i32
    %c0_i32_1 = arith.constant 0 : i32
    return %c0_i32, %c0_i32_0 : i32, i32
  }
  func.func @transform_2(%arg0: i32) -> (i32, i32) {
    %c0_i32 = arith.constant 0 : i32
    %c0_i32_0 = arith.constant 0 : i32
    %c0_i32_1 = arith.constant 0 : i32
    return %c0_i32, %c0_i32_0 : i32, i32
  }
  func.func @transform_3(%arg0: i32) -> (i32, i32) {
    %c0_i32 = arith.constant 0 : i32
    %c0_i32_0 = arith.constant 0 : i32
    %c0_i32_1 = arith.constant 0 : i32
    return %c0_i32, %c0_i32_0 : i32, i32
  }
  func.func @transform_4(%arg0: i32) -> (i32, i32) {
    %c0_i32 = arith.constant 0 : i32
    %c0_i32_0 = arith.constant 0 : i32
    %c0_i32_1 = arith.constant 0 : i32
    return %c0_i32, %c0_i32_0 : i32, i32
  }
  func.func @transform_5(%arg0: i32) -> (i32, i32) {
    %c0_i32 = arith.constant 0 : i32
    %c0_i32_0 = arith.constant 0 : i32
    return %arg0, %c0_i32 : i32, i32
  }
}

</mosaic_0001>

<bundles_post_ra>
// kernel: _lambda_.1
= control target key start
LH: loop header
LB: loop body
LE: loop exit
PB: predicated region body
PF: predicated region fallthrough
CT: control target
= control target key end

     0   :  { %v928_v2 = vmov 0   ;;  %s1178_s0 = inlined_call_operand.vmem [shape: bf16[16,128], index: 0, kind: input, shape index: {}]   ;;  %s1179_s1 = inlined_call_operand.vmem [shape: bf16[128,512], index: 1, kind: input, shape index: {}]   ;;  %s1180_s2 = inlined_call_operand.vmem [shape: f32[1,512], index: 2, kind: input, shape index: {}]   ;;  %s1181_s3 = inlined_call_operand.vmem [shape: bf16[512,128], index: 3, kind: input, shape index: {}]   ;;  %s1182_s4 = inlined_call_operand.vmem [shape: f32[1,128], index: 4, kind: input, shape index: {}]   ;;  %s1183_s5 = inlined_call_operand.hbm [shape: f32[16,128], index: 5, kind: output, shape index: {}]  }
   0x1   :  { %v823_v0 = vld [vmem:[%s1179_s1 + $0x4] ss:$16 sps:$4 sm:$0xff]   ;;  %v825_v1 = vld [vmem:[%s1179_s1 + $0xc] ss:$16 sps:$4 sm:$0xff]   ;;  %170 = vmatprep.mubr.bf16.mxu0 %v928_v2  ;;  %359 = vmatprep.mubr.bf16.mxu1 %v928_v2  ;;  %v827_v3 = vld [vmem:[%s1179_s1] ss:$16 sps:$4 sm:$0xff]  }
   0x2   :  { %138 = vmatprep.subr.bf16.mxu0 %v823_v0  ;;  %v828_v4 = vld [vmem:[%s1179_s1 + $0x8] ss:$16 sps:$4 sm:$0xff]   ;;  %327 = vmatprep.subr.bf16.mxu1 %v825_v1  ;;  %v829_v5 = vld [vmem:[%s1179_s1 + $0x24] ss:$16 sps:$4 sm:$0xff]   ;;  %v831_v6 = vld [vmem:[%s1179_s1 + $0x2c] ss:$16 sps:$4 sm:$0xff]  }
   0x3   :  { %139 = vmatpush1.bf16.msra.mxu0 %v827_v3  ;;  %328 = vmatpush1.bf16.msra.mxu1 %v828_v4  ;;  %v833_v7 = vld [vmem:[%s1179_s1 + $0x20] ss:$16 sps:$4 sm:$0xff]   ;;  %v834_v8 = vld [vmem:[%s1179_s1 + $0x28] ss:$16 sps:$4 sm:$0xff]   ;;  %v835_v9 = vld [vmem:[%s1179_s1 + $0x44] ss:$16 sps:$4 sm:$0xff]  }
   0x4   :  { %140 = vmatprep.subr.bf16.mxu0 %v829_v5  ;;  %329 = vmatprep.subr.bf16.mxu1 %v831_v6  ;;  %v837_v10 = vld [vmem:[%s1179_s1 + $0x4c] ss:$16 sps:$4 sm:$0xff]   ;;  %v839_v11 = vld [vmem:[%s1179_s1 + $0x40] ss:$16 sps:$4 sm:$0xff]   ;;  %v840_v12 = vld [vmem:[%s1179_s1 + $0x48] ss:$16 sps:$4 sm:$0xff]  }
   0x5   :  { %v841_v13 = vld [vmem:[%s1179_s1 + $0x64] ss:$16 sps:$4 sm:$0xff]   ;;  %v843_v14 = vld [vmem:[%s1179_s1 + $0x6c] ss:$16 sps:$4 sm:$0xff]   ;;  %v845_v15 = vld [vmem:[%s1179_s1 + $0x60] ss:$16 sps:$4 sm:$0xff]  }
   0x6   :  { %v846_v16 = vld [vmem:[%s1179_s1 + $0x68] ss:$16 sps:$4 sm:$0xff]   ;;  %v847_v17 = vld [vmem:[%s1179_s1 + $0x84] ss:$16 sps:$4 sm:$0xff]   ;;  %v849_v18 = vld [vmem:[%s1179_s1 + $0x8c] ss:$16 sps:$4 sm:$0xff]  }
   0x7   :  { %141 = vmatpush1.bf16.msra.mxu0 %v833_v7  ;;  %330 = vmatpush1.bf16.msra.mxu1 %v834_v8  ;;  %v851_v19 = vld [vmem:[%s1179_s1 + $0x80] ss:$16 sps:$4 sm:$0xff]   ;;  %v852_v20 = vld [vmem:[%s1179_s1 + $0x88] ss:$16 sps:$4 sm:$0xff]   ;;  %v853_v21 = vld [vmem:[%s1179_s1 + $0xa4] ss:$16 sps:$4 sm:$0xff]  }
   0x8   :  { %142 = vmatprep.subr.bf16.mxu0 %v835_v9  ;;  %331 = vmatprep.subr.bf16.mxu1 %v837_v10  ;;  %v855_v22 = vld [vmem:[%s1179_s1 + $0xac] ss:$16 sps:$4 sm:$0xff]   ;;  %v857_v23 = vld [vmem:[%s1179_s1 + $0xa0] ss:$16 sps:$4 sm:$0xff]   ;;  %v858_v24 = vld [vmem:[%s1179_s1 + $0xa8] ss:$16 sps:$4 sm:$0xff]  }
   0x9   :  { %v859_v25 = vld [vmem:[%s1179_s1 + $0xc4] ss:$16 sps:$4 sm:$0xff]   ;;  %v861_v26 = vld [vmem:[%s1179_s1 + $0xcc] ss:$16 sps:$4 sm:$0xff]   ;;  %v863_v27 = vld [vmem:[%s1179_s1 + $0xc0] ss:$16 sps:$4 sm:$0xff]  }
   0xa   :  { %v864_v28 = vld [vmem:[%s1179_s1 + $0xc8] ss:$16 sps:$4 sm:$0xff]   ;;  %v865_v29 = vld [vmem:[%s1179_s1 + $0xe4] ss:$16 sps:$4 sm:$0xff]   ;;  %v867_v30 = vld [vmem:[%s1179_s1 + $0xec] ss:$16 sps:$4 sm:$0xff]  }
   0xb   :  { %143 = vmatpush1.bf16.msra.mxu0 %v839_v11  ;;  %332 = vmatpush1.bf16.msra.mxu1 %v840_v12  ;;  %v869_v31 = vld [vmem:[%s1179_s1 + $0xe0] ss:$16 sps:$4 sm:$0xff]   ;;  %v870_v32 = vld [vmem:[%s1179_s1 + $0xe8] ss:$16 sps:$4 sm:$0xff]  }
   0xc   :  { %144 = vmatprep.subr.bf16.mxu0 %v841_v13  ;;  %333 = vmatprep.subr.bf16.mxu1 %v843_v14  ;;  %v872_v33 = vld [vmem:[%s1181_s3 + $0xc0] sm:$0xff]   ;;  %v876_v38 = vld [vmem:[%s1181_s3 + $0xc8] sm:$0xff]   ;;  %v880_v42 = vld [vmem:[%s1181_s3 + $0xd0] sm:$0xff]  }
   0xd   :  { %v871_v34 = vld [vmem:[%s1178_s0] sm:$0xff]   ;;  %v877_v39 = vld [vmem:[%s1181_s3 + $0x48] sm:$0xff]   ;;  %v881_v43 = vld [vmem:[%s1181_s3 + $0x50] sm:$0xff]  }
   0xe   :  { %v873_v35 = vld [vmem:[%s1181_s3 + $0x40] sm:$0xff]   ;;  %v878_v40 = vld [vmem:[%s1181_s3 + $0x88] sm:$0xff]   ;;  %v882_v44 = vld [vmem:[%s1181_s3 + $0x90] sm:$0xff]  }
   0xf   :  { %145 = vmatpush1.bf16.msra.mxu0 %v845_v15  ;;  %334 = vmatpush1.bf16.msra.mxu1 %v846_v16  ;;  %v874_v36 = vld [vmem:[%s1181_s3 + $0x80] sm:$0xff]   ;;  %v879_v41 = vld [vmem:[%s1181_s3 + $0x8] sm:$0xff]   ;;  %v883_v45 = vld [vmem:[%s1181_s3 + $0x10] sm:$0xff]  }
  0x10   :  { %146 = vmatprep.subr.bf16.mxu0 %v847_v17  ;;  %335 = vmatprep.subr.bf16.mxu1 %v849_v18  ;;  %v875_v37 = vld [vmem:[%s1181_s3] sm:$0xff]   ;;  %v884_v46 = vld [vmem:[%s1181_s3 + $0xd8] sm:$0xff]   ;;  %v892_v54 = vld [vmem:[%s1181_s3 + $0xe8] sm:$0xff]  }
  0x11   :  { %v885_v47 = vld [vmem:[%s1181_s3 + $0x58] sm:$0xff]   ;;  %v888_v50 = vld [vmem:[%s1181_s3 + $0xe0] sm:$0xff]   ;;  %v893_v55 = vld [vmem:[%s1181_s3 + $0x68] sm:$0xff]  }
  0x12   :  { %v886_v48 = vld [vmem:[%s1181_s3 + $0x98] sm:$0xff]   ;;  %v889_v51 = vld [vmem:[%s1181_s3 + $0x60] sm:$0xff]  }
  0x13   :  { %147 = vmatpush1.bf16.msra.mxu0 %v851_v19  ;;  %336 = vmatpush1.bf16.msra.mxu1 %v852_v20  ;;  %v887_v49 = vld [vmem:[%s1181_s3 + $0x18] sm:$0xff]   ;;  %v890_v52 = vld [vmem:[%s1181_s3 + $0xa0] sm:$0xff]  }
  0x14   :  { %148 = vmatprep.subr.bf16.mxu0 %v853_v21  ;;  %337 = vmatprep.subr.bf16.mxu1 %v855_v22  ;;  %v891_v53 = vld [vmem:[%s1181_s3 + $0x20] sm:$0xff]  }
  0x17   :  { %149 = vmatpush1.bf16.msra.mxu0 %v857_v23  ;;  %338 = vmatpush1.bf16.msra.mxu1 %v858_v24 }
  0x18   :  { %150 = vmatprep.subr.bf16.mxu0 %v859_v25  ;;  %339 = vmatprep.subr.bf16.mxu1 %v861_v26 }
  0x1b   :  { %151 = vmatpush1.bf16.msra.mxu0 %v863_v27  ;;  %340 = vmatpush1.bf16.msra.mxu1 %v864_v28 }
  0x1c   :  { %152 = vmatprep.subr.bf16.mxu0 %v865_v29  ;;  %341 = vmatprep.subr.bf16.mxu1 %v867_v30 }
  0x1f   :  { %153 = vmatpush1.bf16.msra.mxu0 %v869_v31  ;;  %342 = vmatpush1.bf16.msra.mxu1 %v870_v32 }
  0x20   :  { %775 = vmatprep.subr.bf16.mxu0 %v872_v33  ;;  %797 = vmatprep.subr.bf16.mxu1 %v873_v35 }
  0x22   :  { %171 = vmatmul.mubr.bf16.vlgmr.msra.gmra.mrb[0].mxu0 %v871_v34  ;;  %360 = vmatmul.mubr.bf16.vlgmr.msra.gmra.mrb[0].mxu1 %v871_v34 }
  0x23   :  { %776 = vmatpush3.bf16.msra.mxu0 %v874_v36  ;;  %798 = vmatpush3.bf16.msra.mxu1 %v875_v37 }
  0x24   :  { %777 = vmatprep.subr.bf16.mxu0 %v876_v38  ;;  %799 = vmatprep.subr.bf16.mxu1 %v877_v39 }
  0x27   :  { %778 = vmatpush3.bf16.msra.mxu0 %v878_v40  ;;  %800 = vmatpush3.bf16.msra.mxu1 %v879_v41 }
  0x28   :  { %779 = vmatprep.subr.bf16.mxu0 %v880_v42  ;;  %801 = vmatprep.subr.bf16.mxu1 %v881_v43 }
  0x2b   :  { %780 = vmatpush3.bf16.msra.mxu0 %v882_v44  ;;  %802 = vmatpush3.bf16.msra.mxu1 %v883_v45 }
  0x2c   :  { %781 = vmatprep.subr.bf16.mxu0 %v884_v46  ;;  %803 = vmatprep.subr.bf16.mxu1 %v885_v47 }
  0x2f   :  { %782 = vmatpush3.bf16.msra.mxu0 %v886_v48  ;;  %804 = vmatpush3.bf16.msra.mxu1 %v887_v49 }
  0x30   :  { %783 = vmatprep.subr.bf16.mxu0 %v888_v50  ;;  %805 = vmatprep.subr.bf16.mxu1 %v889_v51 }
  0x31   :  { %10 = vsyncpa [#allocation3], 0  ;;  %v894_v56 = vld [vmem:[%s1181_s3 + $0xa8] sm:$0xff]   ;;  %v896_v58 = vld [vmem:[%s1181_s3 + $0xf0] sm:$0xff]   ;;  %v42_v2 = vlaneseq  ;;  %s929_s21 = smov [#allocation2]  }
  0x32   :  { %v895_v57 = vld [vmem:[%s1181_s3 + $0x28] sm:$0xff]   ;;  %v897_v59 = vld [vmem:[%s1181_s3 + $0x70] sm:$0xff]   ;;  %v900_v62 = vld [vmem:[%s1181_s3 + $0xf8] sm:$0xff]   ;;  %s698_s22 = sshll.u32 %s929_s21, 4  ;;  %s699_s22 = int_to_ptr.vmem [resolvable:$true] %s698_s22 }
  0x33   :  { %784 = vmatpush3.bf16.msra.mxu0 %v890_v52  ;;  %806 = vmatpush3.bf16.msra.mxu1 %v891_v53  ;;  %v898_v60 = vld [vmem:[%s1181_s3 + $0xb0] sm:$0xff]   ;;  %v901_v63 = vld [vmem:[%s1181_s3 + $0x78] sm:$0xff]   ;;  %v43_v3 = vshrl.u32 %v42_v2, 7  ;;  %v40_v5 = vld [vmem:[%s1180_s2] sm:$0x3]  ;;  %s904_s23 = scalar_lea.vmem %s699_s22, 256  ;;  %p909_p1 = scmp.lt.s32.totalorder %s699_s22, %s699_s22 }
  0x34   :  { %785 = vmatprep.subr.bf16.mxu0 %v892_v54  ;;  %807 = vmatprep.subr.bf16.mxu1 %v893_v55  ;;  %v899_v61 = vld [vmem:[%s1181_s3 + $0x30] sm:$0xff]   ;;  %v902_v0 = vld [vmem:[%s1181_s3 + $0xb8] sm:$0xff]   ;;  %v235_v6 = vld [vmem:[%s1180_s2 + $0x2] sm:$0x3]  ;;  %p905_p0 = scmp.ne.s32.totalorder %s699_s22, %s904_s23  ;;  %p910_p2 = scmp.lt.s32.totalorder %s904_s23, %s904_s23 }
  0x35   :  { %v903_v1 = vld [vmem:[%s1181_s3 + $0x38] sm:$0xff]   ;;  %v44_v4 = vsub.s32 0, %v43_v3  ;;  %v48_v7 = vsub.s32 1, %v43_v3  ;;  %v774_v48 = vld [vmem:[%s1182_s4] ss:$0 sm:$0xff] }
  0x36   :  { %p911_p3 = por %p910_p2, %p909_p1 }
  0x37   :  { %786 = vmatpush3.bf16.msra.mxu0 %v894_v56  ;;  %808 = vmatpush3.bf16.msra.mxu1 %v895_v57  ;;  %v45_v8 = vrot.slane %v40_v5, %v44_v4  ;;  %v240_v9 = vrot.slane %v235_v6, %v44_v4  ;;  %v49_v10 = vrot.slane %v40_v5, %v48_v7 }
  0x38   :  { %787 = vmatprep.subr.bf16.mxu0 %v896_v58  ;;  %809 = vmatprep.subr.bf16.mxu1 %v897_v59  ;;  %v244_v11 = vrot.slane %v235_v6, %v48_v7  ;;  %p912_p4 = pnand %p911_p3, %p905_p0 }
  0x3b   :  { %788 = vmatpush3.bf16.msra.mxu0 %v898_v60  ;;  %810 = vmatpush3.bf16.msra.mxu1 %v899_v61 }
  0x3c   :  { %789 = vmatprep.subr.bf16.mxu0 %v900_v62  ;;  %811 = vmatprep.subr.bf16.mxu1 %v901_v63 }
  0x3f   :  { %790 = vmatpush3.bf16.msra.mxu0 %v902_v0  ;;  %812 = vmatpush3.bf16.msra.mxu1 %v903_v1 }
  0xf5   :  { %v172_v12 = vpop.f32.mrb[0].mxu0  ;;  %v361_v13 = vpop.f32.mrb[0].mxu1 }
  0xf6   :  { %v173_v14 = vadd.f32 %v172_v12, %v45_v8  ;;  %v362_v15 = vadd.f32 %v361_v13, %v240_v9  ;;  %v174_v16 = vpop.f32.mrb[1].mxu0  ;;  %v363_v17 = vpop.f32.mrb[1].mxu1 }
  0xf7   :  { %v175_v18 = vadd.f32 %v174_v16, %v49_v10  ;;  %v364_v19 = vadd.f32 %v363_v17, %v244_v11  ;;  %v176_v20 = vpop.f32.mrb[2].mxu0  ;;  %v365_v21 = vpop.f32.mrb[2].mxu1 }
  0xf8   :  { %v177_v22 = vadd.f32 %v176_v20, %v45_v8  ;;  %v366_v23 = vadd.f32 %v365_v21, %v240_v9  ;;  %v178_v24 = vpop.f32.mrb[3].mxu0  ;;  %v367_v25 = vpop.f32.mrb[3].mxu1  ;;  %v181_v28 = vmax.f32 %v173_v14, 0.0  ;;  %v370_v29 = vmax.f32 %v362_v15, 0.0 }
  0xf9   :  { %v179_v26 = vadd.f32 %v178_v24, %v49_v10  ;;  %v368_v27 = vadd.f32 %v367_v25, %v244_v11  ;;  %v182_v32 = vmax.f32 %v175_v18, 0.0  ;;  %v371_v33 = vmax.f32 %v364_v19, 0.0 }
  0xfa   :  { %v183_v30 = vmax.f32 %v177_v22, 0.0  ;;  %v372_v31 = vmax.f32 %v366_v23, 0.0 }
  0xfb   :  { %v184_v34 = vmax.f32 %v179_v26, 0.0  ;;  %v373_v35 = vmax.f32 %v368_v27, 0.0 }
  0xfc   :  { %v185_v36 = vpack.c.bf16 %v183_v30, %v181_v28  ;;  %v374_v37 = vpack.c.bf16 %v372_v31, %v370_v29 }
  0xfd   :  { %v186_v38 = vpack.c.bf16 %v184_v34, %v182_v32  ;;  %v375_v39 = vpack.c.bf16 %v373_v35, %v371_v33 }
  0xff   :  { %536 = vmatprep.mubr.bf16.mxu0 %v375_v39  ;;  %673 = vmatprep.mubr.bf16.mxu1 %v186_v38 }
 0x100   :  { %537 = vmatmul.mubr.bf16.vlgmr.msra.gmra.mrb[4].mxu0 %v374_v37  ;;  %674 = vmatmul.mubr.bf16.vlgmr.msra.gmra.mrb[4].mxu1 %v185_v36 }
 0x1d3   :  { %v791_v40 = vpop.f32.mrb[4].mxu0  ;;  %v813_v41 = vpop.f32.mrb[4].mxu1 }
 0x1d4   :  { %v792_v42 = vpop.f32.mrb[5].mxu0  ;;  %v814_v43 = vpop.f32.mrb[5].mxu1 }
 0x1d5   :  { %v793_v44 = vadd.f32 %v792_v42, %v791_v40  ;;  %v815_v45 = vadd.f32 %v814_v43, %v813_v41  ;;  %v794_v46 = vpop.f32.mrb[6].mxu0  ;;  %v816_v47 = vpop.f32.mrb[6].mxu1 }
 0x1d6   :  { %v795_v49 = vpop.f32.mrb[7].mxu0  ;;  %v817_v50 = vpop.f32.mrb[7].mxu1 }
 0x1d7   :  { %v676_v51 = vadd.f32 %v815_v45, %v793_v44  ;;  %v796_v52 = vadd.f32 %v795_v49, %v794_v46  ;;  %v818_v53 = vadd.f32 %v817_v50, %v816_v47 }
 0x1d9   :  { %v689_v54 = vadd.f32 %v774_v48, %v676_v51  ;;  %v679_v55 = vadd.f32 %v818_v53, %v796_v52 }
 0x1db   :  { %691 = vst [vmem:[#allocation2] sm:$0xff] %v689_v54  ;;  %v690_v56 = vadd.f32 %v774_v48, %v679_v55 }
 0x1dd   :  { %692 = vst [vmem:[#allocation2 + $0x8] sm:$0xff] %v690_v56 }
 0x1de   :  { %915 = shalt.err (!%p912_p4)
}
 0x1df   :  { %s916_s25 = scalar_lea.hbm %s1183_s5, 256 }
 0x1e0   :  { %p917_p5 = scmp.ne.s32.totalorder %s1183_s5, %s916_s25  ;;  %p920_p6 = scmp.lt.u32.totalorder %s916_s25, %s1183_s5 }
 0x1e2   :  { %p922_p7 = pnand %p920_p6, %p917_p5 }
 0x1e4   :  { %925 = shalt.err (!%p922_p7)
}
 0x1e5   :  { %s930_s30 = smov 128   ;;  %s931_s6 = smov 8  }
 0x1e6   :  { %704 = dma.vmem_to_hbm [thread:$0]  %s699_s22, 256, %s1183_s5, [#allocation3], %s930_s30, %s930_s30, %s931_s6  }
 0x1e7   :  { %926 = dma.done.wait [#allocation3], 256  }
 0x1e8   :  { %927 = vsyncadd [#allocation3], 4294967040 }
 0x1e9   :  { %708 = vsyncpa [#allocation3], 1 }

</bundles_post_ra>
